<compile_context>
chip_gen: v7x
topology: tpu7x:2x2x1
jax: 0.10.0
libtpu: 0.0.40
codegen_flags: <defaults>
</compile_context>

<pallas_src>
import jax
import jax.numpy as jnp
from jax.experimental import pallas as pl
from jax.experimental.pallas import tpu as pltpu


def _copy_kernel(x_ref, o_ref):
    # Pure pass-through: copy the VMEM tile unchanged.
    o_ref[...] = x_ref[...]


def _choose_lane_cols(n):
    """Largest lane-dense column count (multiple of 128) that divides n."""
    for c in (8192, 4096, 2048, 1024, 512, 256, 128):
        if n % c == 0:
            return c
    return None


def _sublane_pack(dtype):
    """Rows per packed sublane group: 8 for 4-byte, 16 for 2-byte, 32 for 1-byte."""
    itemsize = jnp.dtype(dtype).itemsize
    return max(8, 32 // max(1, itemsize))


def _pick_tile_rows(r, row_bytes, pack, total_bytes):
    """Pick a row-tile size: ~4 MiB per tile, pack-aligned, ragged edge allowed."""
    if r <= pack:
        # Tiny row count: single full-extent block along rows (satisfies the
        # (8,128) rule because the block dim equals the full array dim).
        return r

    target_bytes = 4 << 20  # ~4 MiB/tile: 4 live (double-buffered in+out) = 16 MiB
    tile_r = max(pack, (target_bytes // max(1, row_bytes)) // pack * pack)
    # Never exceed the largest pack-multiple <= r (the last grid step may be
    # a ragged block; Pallas masks the out-of-bounds edge).
    tile_r = min(tile_r, (r // pack) * pack)

    # Mid/large arrays: force >= 2 grid steps so the "parallel" axis can be
    # sharded across v7x's two TensorCores (neutral on single-TC v5e/v6e).
    if total_bytes > (2 << 20) and tile_r >= r:
        half = -(-((r + 1) // 2) // pack) * pack
        if half < r:
            tile_r = half
    return tile_r


def _tiled_copy(flat):
    """Row-tiled Pallas copy of a 2-D array (full last dim per block)."""
    r, c = flat.shape
    itemsize = jnp.dtype(flat.dtype).itemsize
    pack = _sublane_pack(flat.dtype)
    row_bytes = c * itemsize
    total_bytes = r * row_bytes
    tile_r = _pick_tile_rows(r, row_bytes, pack, total_bytes)

    return pl.pallas_call(
        _copy_kernel,
        out_shape=jax.ShapeDtypeStruct((r, c), flat.dtype),
        grid=(pl.cdiv(r, tile_r),),
        in_specs=[pl.BlockSpec((tile_r, c), lambda i: (i, 0))],
        out_specs=pl.BlockSpec((tile_r, c), lambda i: (i, 0)),
        # Row tiles are independent -> "parallel" lets v7x shard the grid
        # across its 2 TensorCores; neutral on single-TC v5e/v6e.
        compiler_params=pltpu.CompilerParams(
            dimension_semantics=("parallel",),
            # 4 MiB tiles * 4 live buffers = 16 MiB, but raise the scoped
            # limit explicitly so v5e (16 MiB default) never sits at the edge.
            vmem_limit_bytes=48 << 20,
        ),
        # Pure memory-bound copy: tell XLA the real cost.
        cost_estimate=pl.CostEstimate(
            flops=0, transcendentals=0, bytes_accessed=2 * total_bytes
        ),
    )(flat)


def _materialized_copy(x):
    """Explicit Pallas copy (only used when a distinct output buffer is required)."""
    # TODO(synk): a DMA-only HBM->HBM variant (memory_space=pl.ANY + chunked
    # make_async_copy) would skip VMEM staging entirely; the VMEM-staged copy
    # below is kept for simplicity and is already near the HBM roofline.
    orig_shape = x.shape
    n = x.size
    if n == 0:
        return x

    c = _choose_lane_cols(n)
    if c is not None:
        # Lane-dense path: reshape to (rows, multiple-of-128 lanes).
        flat = x.reshape(n // c, c)
    else:
        # Element count not a multiple of 128: keep the original last dim as
        # the (full-extent) lane dim and tile over rows — still bounded per
        # block, so no whole-array VMEM blowup on odd shapes.
        if x.ndim >= 2:
            flat = x.reshape(-1, orig_shape[-1])
        else:
            flat = x.reshape(1, -1)

    out = _tiled_copy(flat)
    return out.reshape(orig_shape)


def identity_forward(x, reverse=False, materialize=False):
    """Pallas implementation of Identity.forward(x, reverse) -> x.

    Fast path (default): the identity is a no-op, so return x unchanged —
    no kernel launch, no HBM read/write. Set materialize=True to force a
    fresh buffer via the tiled Pallas copy kernel.
    """
    del reverse  # Identity ignores the reverse flag.
    if not materialize:
        return x
    return _materialized_copy(x)


if __name__ == "__main__":
    key = jax.random.PRNGKey(0)
    # The Identity permuter passes through code/latent tensors; use a small
    # NCHW-style tensor as the primary example.
    x = jax.random.normal(key, (2, 4, 16, 16), dtype=jnp.float32)

    # Default path: true identity (no kernel, no copy).
    y = jax.block_until_ready(identity_forward(x))
    assert y.shape == x.shape and y.dtype == x.dtype
    assert bool(jnp.all(y == x))
    y_rev = jax.block_until_ready(identity_forward(x, reverse=True))
    assert bool(jnp.all(y_rev == x))

    # Materialized path: exercises the tiled Pallas copy kernel.
    y_copy = jax.block_until_ready(identity_forward(x, materialize=True))
    assert y_copy.shape == x.shape and y_copy.dtype == x.dtype
    assert bool(jnp.all(y_copy == x))

    # Larger input: multi-step pipelined grid (8 MiB f32 -> 8192 lanes x 256
    # rows, >= 2 grid steps so both v7x TCs participate).
    x_big = jax.random.normal(jax.random.PRNGKey(0), (8, 16, 128, 128),
                              dtype=jnp.float32)
    y_big = jax.block_until_ready(identity_forward(x_big, materialize=True))
    assert y_big.shape == x_big.shape and bool(jnp.all(y_big == x_big))

    # Awkward row count: exercises the ragged last tile (no exact division).
    x_ragged = jax.random.normal(jax.random.PRNGKey(0), (3, 5, 40, 128),
                                 dtype=jnp.float32)
    y_ragged = jax.block_until_ready(identity_forward(x_ragged, materialize=True))
    assert y_ragged.shape == x_ragged.shape and bool(jnp.all(y_ragged == x_ragged))

    # Odd element count (not a multiple of 128): bounded row-tiled fallback.
    x_odd = jax.random.normal(jax.random.PRNGKey(0), (2, 3, 7, 9),
                              dtype=jnp.float32)
    y_odd = jax.block_until_ready(identity_forward(x_odd, materialize=True))
    assert y_odd.shape == x_odd.shape and bool(jnp.all(y_odd == x_odd))

    # Narrow dtype: sublane-packing-aligned (16-row) tiles for bf16.
    x_bf16 = jax.random.normal(jax.random.PRNGKey(0), (8, 16, 64, 64),
                               dtype=jnp.bfloat16)
    y_bf16 = jax.block_until_ready(identity_forward(x_bf16, materialize=True))
    assert y_bf16.shape == x_bf16.shape and y_bf16.dtype == x_bf16.dtype
    assert bool(jnp.all(y_bf16 == x_bf16))

    print("KERNEL_OK")
</pallas_src>

<mosaic_0001>
module attributes {stable_mosaic.version = 11 : i64} {
  func.func @_copy_kernel(%arg0: i32, %arg1: memref<1x2048xf32, #tpu.memory_space<vmem>>, %arg2: memref<1x2048xf32, #tpu.memory_space<vmem>>) attributes {dimension_semantics = [#tpu.dimension_semantics<parallel>], iteration_bounds = array<i64: 1>, scalar_prefetch = 0 : i64, scratch_operands = 0 : i64, tpu.core_type = #tpu.core_type<tc>, window_params = [{transform_indices = @transform_0, window_bounds = array<i64: 1, 2048>}, {transform_indices = @transform_1, window_bounds = array<i64: 1, 2048>}]} {
    %c0 = arith.constant 0 : index
    %c0_0 = arith.constant 0 : index
    %0 = vector.load %arg1[%c0, %c0_0] : memref<1x2048xf32, #tpu.memory_space<vmem>>, vector<1x2048xf32>
    %c0_1 = arith.constant 0 : index
    %c0_2 = arith.constant 0 : index
    %1 = vector.load %arg2[%c0_1, %c0_2] : memref<1x2048xf32, #tpu.memory_space<vmem>>, vector<1x2048xf32>
    tpu.vector_store %arg2[%c0_1, %c0_2], %0 {strides = array<i32>} : memref<1x2048xf32, #tpu.memory_space<vmem>>, vector<1x2048xf32>,
    return
  }
  func.func @transform_0(%arg0: i32) -> (i32, i32) {
    %c0_i32 = arith.constant 0 : i32
    %c0_i32_0 = arith.constant 0 : i32
    return %arg0, %c0_i32 : i32, i32
  }
  func.func @transform_1(%arg0: i32) -> (i32, i32) {
    %c0_i32 = arith.constant 0 : i32
    %c0_i32_0 = arith.constant 0 : i32
    return %arg0, %c0_i32 : i32, i32
  }
}

</mosaic_0001>

<bundles_post_ra>
// kernel: tpu_custom_call.1
= control target key start
LH: loop header
LB: loop body
LE: loop exit
PB: predicated region body
PF: predicated region fallthrough
CT: control target
= control target key end

     0   :  { %6 = vsyncpa [#allocation3], 0  ;;  %s126_s0 = inlined_call_operand.hbm [shape: f32[1,2048], index: 0, kind: input, shape index: {}]   ;;  %s127_s1 = inlined_call_operand.hbm [shape: f32[1,2048], index: 1, kind: output, shape index: {}]  }
   0x1   :  { %7 = vsyncpa [#allocation4], 0  ;;  %s90_s6 = smov [#allocation2]   ;;  %s42_s10 = scalar_lea.hbm %s126_s0, 256 }
   0x2   :  { %s14_s7 = sshll.u32 %s90_s6, 4  ;;  %p43_p0 = scmp.ne.s32.totalorder %s126_s0, %s42_s10  ;;  %s15_s7 = int_to_ptr.vmem [resolvable:$true] %s14_s7 }
   0x3   :  { %p46_p1 = scmp.lt.u32.totalorder %s42_s10, %s126_s0 }
   0x5   :  { %p48_p2 = pnand %p46_p1, %p43_p0 }
   0x7   :  { %51 = shalt.err (!%p48_p2)
}
   0x8   :  { %s52_s15 = scalar_lea.vmem %s15_s7, 256  ;;  %p57_p4 = scmp.lt.s32.totalorder %s15_s7, %s15_s7 }
   0x9   :  { %p53_p3 = scmp.ne.s32.totalorder %s15_s7, %s52_s15  ;;  %p58_p5 = scmp.lt.s32.totalorder %s52_s15, %s52_s15 }
   0xb   :  { %p59_p6 = por %p58_p5, %p57_p4 }
   0xd   :  { %p60_p7 = pnand %p59_p6, %p53_p3 }
   0xf   :  { %63 = shalt.err (!%p60_p7)
}
  0x10   :  { %17 = dma.hbm_to_vmem [thread:$0]  %s126_s0, 256, %s15_s7, [#allocation3]  }
  0x11   :  { %86 = dma.done.wait [#allocation3], 256  }
  0x12   :  { %87 = vsyncadd [#allocation3], 4294967040  ;;  %s91_s18 = smov [#allocation5]   ;;  %v21_v0 = vld [vmem:[#allocation2] sm:$0xff]  ;;  %v22_v1 = vld [vmem:[#allocation2 + $0x8] sm:$0xff] }
  0x13   :  { %s31_s19 = sshll.u32 %s91_s18, 4  ;;  %23 = vst [vmem:[#allocation5] sm:$0xff] %v21_v0  ;;  %24 = vst [vmem:[#allocation5 + $0x8] sm:$0xff] %v22_v1  ;;  %s32_s19 = int_to_ptr.vmem [resolvable:$true] %s31_s19 }
  0x14   :  { %s64_s20 = scalar_lea.vmem %s32_s19, 256  ;;  %p69_p9 = scmp.lt.s32.totalorder %s32_s19, %s32_s19 }
  0x15   :  { %p65_p8 = scmp.ne.s32.totalorder %s32_s19, %s64_s20  ;;  %p70_p10 = scmp.lt.s32.totalorder %s64_s20, %s64_s20 }
  0x17   :  { %p71_p11 = por %p70_p10, %p69_p9 }
  0x19   :  { %p72_p12 = pnand %p71_p11, %p65_p8 }
  0x1b   :  { %75 = shalt.err (!%p72_p12)
}
  0x1c   :  { %s76_s0 = scalar_lea.hbm %s127_s1, 256 }
  0x1d   :  { %p77_p13 = scmp.ne.s32.totalorder %s127_s1, %s76_s0  ;;  %p80_p0 = scmp.lt.u32.totalorder %s76_s0, %s127_s1 }
  0x1f   :  { %p82_p1 = pnand %p80_p0, %p77_p13 }
  0x21   :  { %85 = shalt.err (!%p82_p1)
}
  0x22   :  { %34 = dma.vmem_to_hbm [thread:$0]  %s32_s19, 256, %s127_s1, [#allocation4]  }
  0x23   :  { %88 = dma.done.wait [#allocation4], 256  }
  0x24   :  { %89 = vsyncadd [#allocation4], 4294967040 }
  0x25   :  { %38 = vsyncpa [#allocation3], 1 }
  0x26   :  { %39 = vsyncpa [#allocation4], 1 }

</bundles_post_ra>
